<compile_context>
chip_gen: v5e
topology: v5e:2x2
jax: 0.10.0
libtpu: 0.0.40
codegen_flags: <defaults>
</compile_context>

<pallas_src>
import functools

import jax
import jax.numpy as jnp
from jax.experimental import pallas as pl
from jax.experimental.pallas import tpu as pltpu

_LANE = 128     # lane width: each layer's OUTPUT dim padded to a multiple of this
_SUBLANE = 8    # f32 sublane count
_MAX_TILE_B = 512   # batch tile for large batches (clears v7x roofline, pipelines DMA)


def _round_up(n, m):
    return ((n + m - 1) // m) * m


# ----------------------------------------------------------------------------
# Pallas kernel: entire MLP for one batch tile.
# refs = (x, w0, b0, w1, b1, ..., w_{L-1}, b_{L-1}, out)
#   x   : [TILE_B, In]      f32 (tiled over the batch grid axis)
#   w_i : [K_i,   N_i]      bf16, VMEM-resident across the whole grid
#   b_i : [1,     N_i]      f32,  VMEM-resident across the whole grid
#   out : [TILE_B, N_last]  f32
# The layer loop is a Python (unrolled) loop; intermediates live in vregs.
# ----------------------------------------------------------------------------
def _fused_mlp_kernel(*refs, num_layers, activation):
    x_ref = refs[0]
    o_ref = refs[-1]
    h = x_ref[...].astype(jnp.float32)
    for i in range(num_layers):
        w = refs[1 + 2 * i][...]            # bf16 [K_i, N_i]
        b = refs[2 + 2 * i][...]            # f32  [1,  N_i], broadcasts over batch
        # bf16 operands on the MXU, f32 accumulation.
        acc = jnp.dot(h.astype(jnp.bfloat16), w,
                      preferred_element_type=jnp.float32)
        h = acc + b                          # f32 elementwise (fast on v5e too)
        if i < num_layers - 1:               # hidden layers only; logits has no act
            if activation == "relu":
                h = jnp.maximum(h, 0.0)
            elif activation == "tanh":
                h = jnp.tanh(h)              # EUP-bound for tiny K; prefer relu
            else:
                raise ValueError(f"unsupported activation: {activation}")
    o_ref[...] = h.astype(o_ref.dtype)


def fused_mlp(x, padded_params, activation, tile_b=None):
    """x: [B, In] f32; padded_params: list of (w bf16 [K, N_p], b f32 [1, N_p])."""
    num_layers = len(padded_params)
    B, In = x.shape
    N_last = padded_params[-1][0].shape[1]

    if tile_b is None:
        # Single block if the whole batch fits (block dim == array dim is always
        # legal); otherwise 512-row tiles (divisible by 8, pipelined, megacore).
        tile_b = B if B <= _MAX_TILE_B else _MAX_TILE_B
    grid = (pl.cdiv(B, tile_b),)

    flat = []
    in_specs = [pl.BlockSpec((tile_b, In), lambda i: (i, 0))]
    for w, b in padded_params:
        in_specs.append(pl.BlockSpec(w.shape, lambda i: (0, 0)))   # stays resident
        in_specs.append(pl.BlockSpec(b.shape, lambda i: (0, 0)))   # stays resident
        flat += [w, b]
    out_spec = pl.BlockSpec((tile_b, N_last), lambda i: (i, 0))

    # VMEM budget: resident weights/biases (x2 for buffering slack) +
    # double-buffered activation tiles + headroom.
    param_bytes = sum(a.size * a.dtype.itemsize for a in flat)
    act_cols = In + sum(w.shape[1] for w, _ in padded_params)
    act_bytes = 4 * tile_b * act_cols * 4
    vmem_limit = int(min(64 << 20,
                         max(2 * param_bytes + act_bytes + (1 << 20), 8 << 20)))

    kernel = functools.partial(
        _fused_mlp_kernel, num_layers=num_layers, activation=activation
    )
    return pl.pallas_call(
        kernel,
        out_shape=jax.ShapeDtypeStruct((B, N_last), jnp.float32),
        grid=grid,
        in_specs=in_specs,
        out_specs=out_spec,
        compiler_params=pltpu.CompilerParams(
            dimension_semantics=("parallel",),
            vmem_limit_bytes=vmem_limit,
        ),
    )(x, *flat)


# ----------------------------------------------------------------------------
# Parameters: deterministic init (logical shapes) + one-time padding / bf16 cast
# ----------------------------------------------------------------------------
def init_fcnet_params(key, num_inputs, num_outputs, hiddens):
    """Hidden SlimFC layers + logits layer, stored as (w [in,out], b [out]) f32."""
    params = []
    last = num_inputs
    for size in list(hiddens) + [num_outputs]:
        key, kw, kb = jax.random.split(key, 3)
        scale = 1.0 / jnp.sqrt(jnp.asarray(last, jnp.float32))
        w = jax.random.uniform(kw, (last, size), jnp.float32, -scale, scale)
        b = jax.random.uniform(kb, (size,), jnp.float32, -scale, scale)
        params.append((w, b))
        last = size
    return params


def pad_params(params):
    """bf16 weights; pad only the OUTPUT (N) dim to 128 lanes.

    The contraction (K) dim of layer 0 stays at the raw input width; later
    layers inherit the previous layer's padded N.  Zero padding is exact:
    padded columns stay 0 through relu/tanh and contribute nothing downstream.
    Bias is kept f32, pre-shaped [1, N_p].
    """
    padded = []
    prev_out_p = None
    for li, (w, b) in enumerate(params):
        In, Out = w.shape
        K_p = In if li == 0 else prev_out_p
        Out_p = _round_up(Out, _LANE)
        w_p = (jnp.zeros((K_p, Out_p), jnp.bfloat16)
               .at[:In, :Out].set(w.astype(jnp.bfloat16)))
        b_p = jnp.zeros((1, Out_p), jnp.float32).at[0, :Out].set(b)
        padded.append((w_p, b_p))
        prev_out_p = Out_p
    return padded


# ----------------------------------------------------------------------------
# Forward pass (mirrors MyFullyConnectedNetwork.forward)
# ----------------------------------------------------------------------------
@functools.partial(jax.jit, static_argnames=("num_outputs", "activation"))
def _fcnet_logits(padded_params, x, *, num_outputs, activation):
    y_p = fused_mlp(x, padded_params, activation)
    return y_p[:, :num_outputs]          # cheap lane slice only; no batch pad/slice


def fcnet_forward(padded_params, x, num_outputs, activation="relu",
                  hidden_state=None):
    logits = _fcnet_logits(padded_params, x, num_outputs=num_outputs,
                           activation=activation)
    return logits, hidden_state


# ----------------------------------------------------------------------------
# Pure-JAX f32 reference on the unpadded params
# ----------------------------------------------------------------------------
def fcnet_forward_ref(params, x, activation="relu"):
    h = x
    for w, b in params[:-1]:
        h = h @ w + b
        h = jnp.maximum(h, 0.0) if activation == "relu" else jnp.tanh(h)
    w, b = params[-1]
    return h @ w + b


if __name__ == "__main__":
    # model_config = {'hiddens': [32, 32], 'activation': 'ReLU'}
    num_inputs = 16
    num_outputs = 8
    hiddens = [32, 32]
    batch = 2

    key = jax.random.PRNGKey(0)
    key, kx = jax.random.split(key)
    x = jax.random.normal(kx, (batch, num_inputs), jnp.float32)

    params = init_fcnet_params(key, num_inputs, num_outputs, hiddens)
    padded_params = pad_params(params)   # padded + bf16-cast once, reused per forward

    logits, hidden_state = fcnet_forward(padded_params, x, num_outputs,
                                         activation="relu", hidden_state=None)
    logits = jax.block_until_ready(logits)

    ref = fcnet_forward_ref(params, x, activation="relu")
    assert logits.shape == (batch, num_outputs), logits.shape
    # bf16 weights / bf16 matmul operands with f32 accumulation: compare against
    # the f32 reference at a bf16-appropriate tolerance.
    assert jnp.allclose(logits, ref, atol=3e-2, rtol=3e-2), "mismatch vs reference"
    assert hidden_state is None

    print("KERNEL_OK")
</pallas_src>

<mosaic_0001>
module attributes {stable_mosaic.version = 11 : i64} {
  func.func @_fused_mlp_kernel(%arg0: i32, %arg1: memref<2x16xf32, #tpu.memory_space<vmem>>, %arg2: memref<16x128xbf16, #tpu.memory_space<vmem>>, %arg3: memref<1x128xf32, #tpu.memory_space<vmem>>, %arg4: memref<128x128xbf16, #tpu.memory_space<vmem>>, %arg5: memref<1x128xf32, #tpu.memory_space<vmem>>, %arg6: memref<128x128xbf16, #tpu.memory_space<vmem>>, %arg7: memref<1x128xf32, #tpu.memory_space<vmem>>, %arg8: memref<2x128xf32, #tpu.memory_space<vmem>>) attributes {dimension_semantics = [#tpu.dimension_semantics<parallel>], iteration_bounds = array<i64: 1>, scalar_prefetch = 0 : i64, scratch_operands = 0 : i64, tpu.core_type = #tpu.core_type<tc>, window_params = [{transform_indices = @transform_0, window_bounds = array<i64: 2, 16>}, {pipeline_mode = #tpu.pipeline_mode<synchronous>, transform_indices = @transform_1, window_bounds = array<i64: 16, 128>}, {pipeline_mode = #tpu.pipeline_mode<synchronous>, transform_indices = @transform_2, window_bounds = array<i64: 1, 128>}, {pipeline_mode = #tpu.pipeline_mode<synchronous>, transform_indices = @transform_3, window_bounds = array<i64: 128, 128>}, {pipeline_mode = #tpu.pipeline_mode<synchronous>, transform_indices = @transform_4, window_bounds = array<i64: 1, 128>}, {pipeline_mode = #tpu.pipeline_mode<synchronous>, transform_indices = @transform_5, window_bounds = array<i64: 128, 128>}, {pipeline_mode = #tpu.pipeline_mode<synchronous>, transform_indices = @transform_6, window_bounds = array<i64: 1, 128>}, {transform_indices = @transform_7, window_bounds = array<i64: 2, 128>}]} {
    %c0 = arith.constant 0 : index
    %c0_0 = arith.constant 0 : index
    %0 = vector.load %arg1[%c0, %c0_0] : memref<2x16xf32, #tpu.memory_space<vmem>>, vector<2x16xf32>
    %c0_1 = arith.constant 0 : index
    %c0_2 = arith.constant 0 : index
    %1 = vector.load %arg2[%c0_1, %c0_2] : memref<16x128xbf16, #tpu.memory_space<vmem>>, vector<16x128xbf16>
    %c0_3 = arith.constant 0 : index
    %c0_4 = arith.constant 0 : index
    %2 = vector.load %arg3[%c0_3, %c0_4] : memref<1x128xf32, #tpu.memory_space<vmem>>, vector<1x128xf32>
    %3 = arith.truncf %0 : vector<2x16xf32> to vector<2x16xbf16>
    %cst = arith.constant dense<0.000000e+00> : vector<2x128xf32>
    %4 = tpu.matmul %3, %1, %cst {dimension_numbers = #tpu.dot_dimension_numbers<[1], [0], [0], [1], [0, 0, 1, 1], [], []>} : vector<2x16xbf16>, vector<16x128xbf16>, vector<2x128xf32> -> vector<2x128xf32>
    %5 = vector.broadcast %2 : vector<1x128xf32> to vector<2x128xf32>
    %6 = arith.addf %4, %5 : vector<2x128xf32>
    %cst_5 = arith.constant 0.000000e+00 : f32
    %7 = vector.broadcast %cst_5 : f32 to vector<2x128xf32>
    %8 = arith.maximumf %6, %7 : vector<2x128xf32>
    %c0_6 = arith.constant 0 : index
    %c0_7 = arith.constant 0 : index
    %9 = vector.load %arg4[%c0_6, %c0_7] : memref<128x128xbf16, #tpu.memory_space<vmem>>, vector<128x128xbf16>
    %c0_8 = arith.constant 0 : index
    %c0_9 = arith.constant 0 : index
    %10 = vector.load %arg5[%c0_8, %c0_9] : memref<1x128xf32, #tpu.memory_space<vmem>>, vector<1x128xf32>
    %11 = arith.truncf %8 : vector<2x128xf32> to vector<2x128xbf16>
    %cst_10 = arith.constant dense<0.000000e+00> : vector<2x128xf32>
    %12 = tpu.matmul %11, %9, %cst_10 {dimension_numbers = #tpu.dot_dimension_numbers<[1], [0], [0], [1], [0, 0, 1, 1], [], []>} : vector<2x128xbf16>, vector<128x128xbf16>, vector<2x128xf32> -> vector<2x128xf32>
    %13 = vector.broadcast %10 : vector<1x128xf32> to vector<2x128xf32>
    %14 = arith.addf %12, %13 : vector<2x128xf32>
    %cst_11 = arith.constant 0.000000e+00 : f32
    %15 = vector.broadcast %cst_11 : f32 to vector<2x128xf32>
    %16 = arith.maximumf %14, %15 : vector<2x128xf32>
    %c0_12 = arith.constant 0 : index
    %c0_13 = arith.constant 0 : index
    %17 = vector.load %arg6[%c0_12, %c0_13] : memref<128x128xbf16, #tpu.memory_space<vmem>>, vector<128x128xbf16>
    %c0_14 = arith.constant 0 : index
    %c0_15 = arith.constant 0 : index
    %18 = vector.load %arg7[%c0_14, %c0_15] : memref<1x128xf32, #tpu.memory_space<vmem>>, vector<1x128xf32>
    %19 = arith.truncf %16 : vector<2x128xf32> to vector<2x128xbf16>
    %cst_16 = arith.constant dense<0.000000e+00> : vector<2x128xf32>
    %20 = tpu.matmul %19, %17, %cst_16 {dimension_numbers = #tpu.dot_dimension_numbers<[1], [0], [0], [1], [0, 0, 1, 1], [], []>} : vector<2x128xbf16>, vector<128x128xbf16>, vector<2x128xf32> -> vector<2x128xf32>
    %21 = vector.broadcast %18 : vector<1x128xf32> to vector<2x128xf32>
    %22 = arith.addf %20, %21 : vector<2x128xf32>
    %c0_17 = arith.constant 0 : index
    %c0_18 = arith.constant 0 : index
    %23 = vector.load %arg8[%c0_17, %c0_18] : memref<2x128xf32, #tpu.memory_space<vmem>>, vector<2x128xf32>
    tpu.vector_store %arg8[%c0_17, %c0_18], %22 {strides = array<i32>} : memref<2x128xf32, #tpu.memory_space<vmem>>, vector<2x128xf32>,
    return
  }
  func.func @transform_0(%arg0: i32) -> (i32, i32) {
    %c0_i32 = arith.constant 0 : i32
    %c0_i32_0 = arith.constant 0 : i32
    return %arg0, %c0_i32 : i32, i32
  }
  func.func @transform_1(%arg0: i32) -> (i32, i32) {
    %c0_i32 = arith.constant 0 : i32
    %c0_i32_0 = arith.constant 0 : i32
    %c0_i32_1 = arith.constant 0 : i32
    return %c0_i32, %c0_i32_0 : i32, i32
  }
  func.func @transform_2(%arg0: i32) -> (i32, i32) {
    %c0_i32 = arith.constant 0 : i32
    %c0_i32_0 = arith.constant 0 : i32
    %c0_i32_1 = arith.constant 0 : i32
    return %c0_i32, %c0_i32_0 : i32, i32
  }
  func.func @transform_3(%arg0: i32) -> (i32, i32) {
    %c0_i32 = arith.constant 0 : i32
    %c0_i32_0 = arith.constant 0 : i32
    %c0_i32_1 = arith.constant 0 : i32
    return %c0_i32, %c0_i32_0 : i32, i32
  }
  func.func @transform_4(%arg0: i32) -> (i32, i32) {
    %c0_i32 = arith.constant 0 : i32
    %c0_i32_0 = arith.constant 0 : i32
    %c0_i32_1 = arith.constant 0 : i32
    return %c0_i32, %c0_i32_0 : i32, i32
  }
  func.func @transform_5(%arg0: i32) -> (i32, i32) {
    %c0_i32 = arith.constant 0 : i32
    %c0_i32_0 = arith.constant 0 : i32
    %c0_i32_1 = arith.constant 0 : i32
    return %c0_i32, %c0_i32_0 : i32, i32
  }
  func.func @transform_6(%arg0: i32) -> (i32, i32) {
    %c0_i32 = arith.constant 0 : i32
    %c0_i32_0 = arith.constant 0 : i32
    %c0_i32_1 = arith.constant 0 : i32
    return %c0_i32, %c0_i32_0 : i32, i32
  }
  func.func @transform_7(%arg0: i32) -> (i32, i32) {
    %c0_i32 = arith.constant 0 : i32
    %c0_i32_0 = arith.constant 0 : i32
    return %arg0, %c0_i32 : i32, i32
  }
}

</mosaic_0001>

<bundles_post_ra>
// kernel: _fcnet_logits.1
= control target key start
LH: loop header
LB: loop body
LE: loop exit
PB: predicated region body
PF: predicated region fallthrough
CT: control target
= control target key end

     0   :  { %12 = vsyncpa [#allocation3], 0  ;;  %s601_s0 = inlined_call_operand.vmem [shape: f32[2,16], index: 0, kind: input, shape index: {}]   ;;  %s602_s1 = inlined_call_operand.hbm [shape: bf16[16,128], index: 1, kind: input, shape index: {}]   ;;  %s603_s2 = inlined_call_operand.hbm [shape: f32[1,128], index: 2, kind: input, shape index: {}]   ;;  %s604_s3 = inlined_call_operand.hbm [shape: bf16[128,128], index: 3, kind: input, shape index: {}]   ;;  %s605_s4 = inlined_call_operand.vmem [shape: f32[1,128], index: 4, kind: input, shape index: {}]   ;;  %s606_s5 = inlined_call_operand.hbm [shape: bf16[128,128], index: 5, kind: input, shape index: {}]   ;;  %s607_s6 = inlined_call_operand.vmem [shape: f32[1,128], index: 6, kind: input, shape index: {}]   ;;  %s608_s7 = inlined_call_operand.hbm [shape: f32[2,128], index: 7, kind: output, shape index: {}]  }
   0x1   :  { %13 = vsyncpa [#allocation6], 0 }
   0x2   :  { %14 = vsyncpa [#allocation9], 0  ;;  %s36_s26 = sshll.u32 %s603_s2, 4  ;;  %s37_s26 = int_to_ptr.hbm [resolvable:$true] %s36_s26 }
   0x3   :  { %15 = vsyncpa [#allocation4], 0  ;;  %s530_s27 = smov [#allocation5]   ;;  %s22_s8 = sshll.u32 %s602_s1, 4  ;;  %s23_s8 = int_to_ptr.hbm [resolvable:$true] %s22_s8 }
   0x4   :  { %s38_s28 = sshll.u32 %s530_s27, 4  ;;  %s531_s9 = smov [#allocation2]   ;;  %s39_s28 = int_to_ptr.vmem [resolvable:$true] %s38_s28 }
   0x5   :  { %41 = dma.hbm_to_vmem [thread:$0]  %s37_s26, 16, %s39_s28, [#allocation6]  }
   0x6   :  { %s24_s10 = sshll.u32 %s531_s9, 4  ;;  %s532_s11 = smov 64   ;;  %s25_s10 = int_to_ptr.vmem [resolvable:$true] %s24_s10 }
   0x7   :  { %s533_s12 = smov 4   ;;  %s46_s2 = sshll.u32 %s604_s3, 4  ;;  %s47_s2 = int_to_ptr.hbm [resolvable:$true] %s46_s2 }
   0x8   :  { %30 = dma.hbm_to_vmem [thread:$0]  %s23_s8, 128, %s25_s10, [#allocation3], %s532_s11, %s532_s11, %s533_s12  }
   0x9   :  { %s534_s15 = smov [#allocation7]   ;;  %s61_s1 = sshll.u32 %s606_s5, 4  ;;  %s62_s1 = int_to_ptr.hbm [resolvable:$true] %s61_s1 }
   0xa   :  { %s48_s16 = sshll.u32 %s534_s15, 4  ;;  %s535_s19 = smov [#allocation8]   ;;  %s49_s16 = int_to_ptr.vmem [resolvable:$true] %s48_s16 }
   0xb   :  { %54 = dma.hbm_to_vmem [thread:$0]  %s47_s2, 1024, %s49_s16, [#allocation6], %s532_s11, %s532_s11, %s533_s12  }
   0xc   :  { %s63_s20 = sshll.u32 %s535_s19, 4  ;;  %s64_s20 = int_to_ptr.vmem [resolvable:$true] %s63_s20 }
   0xd   :  { %69 = dma.hbm_to_vmem [thread:$0]  %s62_s1, 1024, %s64_s20, [#allocation9], %s532_s11, %s532_s11, %s533_s12  }
   0xe   :  { %522 = dma.done.wait [#allocation3], 128  }
   0xf   :  { %523 = vsyncadd [#allocation3], 4294967168 }
  0x10   :  { %524 = dma.done.wait [#allocation6], 1040  }
  0x11   :  { %525 = vsyncadd [#allocation6], 4294966256 }
  0x12   :  { %526 = dma.done.wait [#allocation9], 1024  }
  0x13   :  { %527 = vsyncadd [#allocation9], 4294966272  ;;  %v375_v0 = vld [vmem:[#allocation2] sm:$0xff]  ;;  %vm103_vm0 = vcmask 130048   ;;  %v381_v5 = vld [vmem:[#allocation7 + $0x28] sm:$0xff]  ;;  %s536_s24 = smov [#allocation10]  }
  0x14   :  { %v89_v1 = vld [vmem:[%s601_s0] sm:$0x3]  ;;  %v383_v2 = vld [vmem:[#allocation7 + $0x38] sm:$0xff]  ;;  %114 = vmatpush.bf16.msra.mxu0 %v375_v0  ;;  %v380_v6 = vld [vmem:[#allocation7 + $0x20] sm:$0xff]  ;;  %s292_s25 = sshll.u32 %s536_s24, 4  ;;  %s294_s28 = sshll.u32 %s608_s7, 4  ;;  %s293_s25 = int_to_ptr.vmem [resolvable:$true] %s292_s25  ;;  %s295_s28 = int_to_ptr.hbm [resolvable:$true] %s294_s28 }
  0x15   :  { %v93_v3 = vpack.c.bf16 %v89_v1, %v89_v1  ;;  %190 = vmatpush.bf16.msra.mxu1 %v383_v2  ;;  %v382_v4 = vld [vmem:[#allocation7 + $0x30] sm:$0xff]  ;;  %v379_v7 = vld [vmem:[#allocation7 + $0x18] sm:$0xff]  ;;  %v377_v9 = vld [vmem:[#allocation7 + $0x8] sm:$0xff] }
  0x16   :  { %v378_v8 = vld [vmem:[#allocation7 + $0x10] sm:$0xff]  ;;  %v376_v10 = vld [vmem:[#allocation7] sm:$0xff]  ;;  %v391_v11 = vld [vmem:[#allocation8 + $0x38] sm:$0xff] }
  0x17   :  { %310 = vmatmul.msk.bf16.vlgmr.msra.gmra.mxu0 %vm103_vm0, %v93_v3  ;;  %273 = vmatpush.bf16.msra.mxu2 %v391_v11  ;;  %v390_v12 = vld [vmem:[#allocation8 + $0x30] sm:$0xff]  ;;  %v389_v13 = vld [vmem:[#allocation8 + $0x28] sm:$0xff]  ;;  %v388_v14 = vld [vmem:[#allocation8 + $0x20] sm:$0xff] }
  0x18   :  { %v387_v15 = vld [vmem:[#allocation8 + $0x18] sm:$0xff]  ;;  %v386_v16 = vld [vmem:[#allocation8 + $0x10] sm:$0xff]  ;;  %v385_v23 = vld [vmem:[#allocation8 + $0x8] sm:$0xff] }
  0x19   :  { %191 = vmatpush.bf16.msra.mxu1 %v382_v4  ;;  %v399_v17 = vld [vmem:[#allocation5] ss:$0 sm:$0xff]  ;;  %v384_v24 = vld [vmem:[#allocation8] sm:$0xff]  ;;  %v400_v25 = vld [vmem:[%s605_s4] ss:$0 sm:$0xff] }
  0x1a   :  { %v401_v31 = vld [vmem:[%s607_s6] ss:$0 sm:$0xff] }
  0x1b   :  { %274 = vmatpush.bf16.msra.mxu2 %v390_v12 }
  0x1d   :  { %192 = vmatpush.bf16.msra.mxu1 %v381_v5 }
  0x1f   :  { %275 = vmatpush.bf16.msra.mxu2 %v389_v13 }
  0x21   :  { %193 = vmatpush.bf16.msra.mxu1 %v380_v6 }
  0x23   :  { %276 = vmatpush.bf16.msra.mxu2 %v388_v14 }
  0x25   :  { %194 = vmatpush.bf16.msra.mxu1 %v379_v7 }
  0x27   :  { %277 = vmatpush.bf16.msra.mxu2 %v387_v15 }
  0x29   :  { %195 = vmatpush.bf16.msra.mxu1 %v378_v8 }
  0x2b   :  { %278 = vmatpush.bf16.msra.mxu2 %v386_v16 }
  0x2d   :  { %196 = vmatpush.bf16.msra.mxu1 %v377_v9 }
  0x2f   :  { %279 = vmatpush.bf16.msra.mxu2 %v385_v23 }
  0x31   :  { %197 = vmatpush.bf16.msra.mxu1 %v376_v10 }
  0x33   :  { %280 = vmatpush.bf16.msra.mxu2 %v384_v24 }
  0x94   :  { %v116_v18 = vpop.f32.mrf.mxu0 }
  0x95   :  { %v117_v19 = vadd.f32 %v399_v17, %v116_v18 }
  0x97   :  { %v120_v20 = vmax.f32 %v117_v19, 0.0 }
  0x99   :  { %v138_v21 = vpack.c.bf16 %v120_v20, %v120_v20 }
  0x9b   :  { %198 = vmatmul.bf16.vlgmr.msra.gmra.mxu1 %v138_v21 }
  0x9c   :  { %v118_v22 = vpop.f32.mrf.mxu0 }
 0x118   :  { %v199_v26 = vpop.f32.mrf.mxu1 }
 0x119   :  { %v200_v27 = vadd.f32 %v400_v25, %v199_v26 }
 0x11b   :  { %v203_v28 = vmax.f32 %v200_v27, 0.0 }
 0x11d   :  { %v221_v29 = vpack.c.bf16 %v203_v28, %v203_v28 }
 0x11f   :  { %281 = vmatmul.bf16.vlgmr.msra.gmra.mxu2 %v221_v29 }
 0x120   :  { %v201_v30 = vpop.f32.mrf.mxu1 }
 0x1a2   :  { %v282_v32 = vpop.f32.mrf.mxu2 }
 0x1a3   :  { %v283_v33 = vadd.f32 %v401_v31, %v282_v32 }
 0x1a5   :  { %286 = vst [vmem:[#allocation10] sm:$0x3] %v283_v33 }
 0x1a6   :  { %297 = dma.vmem_to_hbm [thread:$0]  %s293_s25, 32, %s295_s28, [#allocation4]  }
 0x1aa   :  { %v284_v34 = vpop.f32.mrf.mxu2 }
 0x1ab   :  { %528 = dma.done.wait [#allocation4], 32  }
 0x1ac   :  { %529 = vsyncadd [#allocation4], 4294967264 }
 0x1ad   :  { %302 = vsyncpa [#allocation3], 1 }
 0x1ae   :  { %303 = vsyncpa [#allocation6], 1 }
 0x1af   :  { %304 = vsyncpa [#allocation9], 1 }
 0x1b0   :  { %305 = vsyncpa [#allocation4], 1 }

</bundles_post_ra>
